<compile_context>
chip_gen: v6e
topology: v6e:2x2x1
jax: 0.10.0
libtpu: 0.0.40
codegen_flags: <defaults>
</compile_context>

<pallas_src>
import functools

import jax
import jax.numpy as jnp
from jax.experimental import pallas as pl
from jax.experimental.pallas import tpu as pltpu


def _ff_resblock_kernel(x_ref, w1_ref, b1_ref, w2_ref, b2_ref,
                        gamma_ref, beta_ref, o_ref, *, eps, inv_d):
    """One row tile: relu(x@W1+b1) -> relu(.@W2+b2) -> +x -> LayerNorm."""
    x_f32 = x_ref[...].astype(jnp.float32)

    # MXU matmuls in the weight dtype (bf16 when requested), f32 accumulation.
    h = jnp.dot(x_ref[...].astype(w1_ref.dtype), w1_ref[...],
                preferred_element_type=jnp.float32)
    h = jnp.maximum(h + b1_ref[...].astype(jnp.float32), 0.0)

    y = jnp.dot(h.astype(w2_ref.dtype), w2_ref[...],
                preferred_element_type=jnp.float32)
    y = jnp.maximum(y + b2_ref[...].astype(jnp.float32), 0.0)

    # Residual + LayerNorm in f32.  Single-pass stats: var = E[z^2] - mean^2
    # (one reduction pair, no second (z - mean)^2 sweep over the tile).
    z = x_f32 + y
    s1 = jnp.sum(z, axis=-1, keepdims=True)
    s2 = jnp.sum(z * z, axis=-1, keepdims=True)
    mean = s1 * inv_d
    var = jnp.maximum(s2 * inv_d - mean * mean, 0.0)
    zn = (z - mean) * jax.lax.rsqrt(var + eps)
    o_ref[...] = (zn * gamma_ref[...].astype(jnp.float32)
                  + beta_ref[...].astype(jnp.float32)).astype(o_ref.dtype)


def _round_up(n, m):
    return ((n + m - 1) // m) * m


def ff_resblock(x, w1, b1, w2, b2, gamma, beta, *, eps=1e-5, tile_m=256,
                matmul_dtype=None, weight_buffers=1):
    """Fused FFResblock forward.

    x: (..., d_model); w1: (d_model, d_ff); w2: (d_ff, d_model).
    matmul_dtype: dtype used for the MXU operands (e.g. jnp.bfloat16); the
    residual add and LayerNorm always run in float32.  Returns x.shape/x.dtype.
    """
    orig_shape = x.shape
    d_model = orig_shape[-1]
    d_ff = w1.shape[1]
    x2d = x.reshape(-1, d_model)
    n_rows = x2d.shape[0]

    if matmul_dtype is None:
        matmul_dtype = x.dtype
    w1m = w1.astype(matmul_dtype)
    w2m = w2.astype(matmul_dtype)

    # Bias / LayerNorm params stay in f32 (applied on the f32 accumulator),
    # reshaped to (1, D) rows so they broadcast inside the kernel.
    f32 = jnp.float32
    b1r = b1.astype(f32).reshape(1, d_ff)
    b2r = b2.astype(f32).reshape(1, d_model)
    gr = gamma.astype(f32).reshape(1, d_model)
    br = beta.astype(f32).reshape(1, d_model)

    # Large row tile for MXU utilization, capped to the (sublane-rounded) row
    # count.  No host-side padding: Pallas masks the partial last block, and
    # every op in the kernel is row-wise independent, so pad rows never leak.
    tile_m = max(8, min(_round_up(tile_m, 8), _round_up(n_rows, 8)))
    grid = (pl.cdiv(n_rows, tile_m),)

    # NOTE: d_model should be padded to a multiple of 128 lanes at model-build
    # time for lane-dense stores on real configs (mask pad lanes in the LN
    # reduction if you do).  Not needed for this demo (block == full dim).
    # TODO(synk): add a d_ff-tiled streaming path (inner "arbitrary" grid axis
    # + f32 accumulator scratch) for configs whose weights don't fit VMEM
    # (v7x has only 64 MiB).

    kernel = functools.partial(_ff_resblock_kernel, eps=eps, inv_d=1.0 / d_model)

    def build(wb):
        def const_spec(shape):
            # Grid-invariant operands: single-buffer them when requested.
            if wb is None:
                return pl.BlockSpec(shape, lambda i: (0, 0))
            return pl.BlockSpec(shape, lambda i: (0, 0),
                                pipeline_mode=pl.Buffered(wb))

        # Explicit VMEM budget so large tiles aren't capped by the default
        # scoped limit: resident weights (x buffer count), double-buffered
        # x/out tiles, f32 intermediates, small params, plus headroom.
        mm_bytes = jnp.dtype(matmul_dtype).itemsize
        act_bytes = jnp.dtype(x.dtype).itemsize
        wb_count = wb if wb else 2
        need = (wb_count * 2 * d_model * d_ff * mm_bytes        # W1 + W2
                + 4 * tile_m * d_model * act_bytes              # x/out, 2 bufs each
                + tile_m * d_ff * 4                             # h (f32)
                + 4 * tile_m * d_model * 4                      # f32 temporaries
                + 2 * (2 * d_ff + 6 * d_model) * 4)             # biases / LN params
        try:
            cap = int(pltpu.get_tpu_info().vmem_capacity_bytes * 7 // 8)
        except Exception:
            cap = 96 << 20
        vmem_limit = int(min(max(int(need * 1.5) + (4 << 20), 16 << 20), cap))

        return pl.pallas_call(
            kernel,
            out_shape=jax.ShapeDtypeStruct((n_rows, d_model), x.dtype),
            grid_spec=pltpu.PrefetchScalarGridSpec(
                num_scalar_prefetch=0,
                grid=grid,
                in_specs=[
                    pl.BlockSpec((tile_m, d_model), lambda i: (i, 0)),  # x rows
                    const_spec((d_model, d_ff)),                        # W1
                    const_spec((1, d_ff)),                              # b1
                    const_spec((d_ff, d_model)),                        # W2
                    const_spec((1, d_model)),                           # b2
                    const_spec((1, d_model)),                           # gamma
                    const_spec((1, d_model)),                           # beta
                ],
                out_specs=pl.BlockSpec((tile_m, d_model), lambda i: (i, 0)),
            ),
            compiler_params=pltpu.CompilerParams(
                dimension_semantics=("parallel",),
                vmem_limit_bytes=vmem_limit,
            ),
        )

    args = (x2d, w1m, b1r, w2m, b2r, gr, br)
    try:
        out = jax.block_until_ready(build(weight_buffers)(*args))
    except Exception:
        # Fallback if pl.Buffered(weight_buffers) is rejected on this backend.
        if weight_buffers is None:
            raise
        out = jax.block_until_ready(build(None)(*args))

    return out.reshape(orig_shape)


def _reference(x, w1, b1, w2, b2, gamma, beta, eps=1e-5):
    x = x.astype(jnp.float32)
    h = jax.nn.relu(x @ w1 + b1)
    z = x + jax.nn.relu(h @ w2 + b2)
    mean = jnp.mean(z, axis=-1, keepdims=True)
    var = jnp.mean((z - mean) ** 2, axis=-1, keepdims=True)
    return (z - mean) / jnp.sqrt(var + eps) * gamma + beta


if __name__ == "__main__":
    # Small deterministic problem: batch=2, seq=8, d_model=32, d_ff=64.
    batch, seq, d_model, d_ff = 2, 8, 32, 64
    key = jax.random.PRNGKey(0)
    kx, k1, kb1, k2, kb2 = jax.random.split(key, 5)

    x = jax.random.normal(kx, (batch, seq, d_model), dtype=jnp.float32)

    # Deterministic "PyTorch-ish" init (uniform in +-1/sqrt(fan_in)).
    lim1 = 1.0 / (d_model ** 0.5)
    lim2 = 1.0 / (d_ff ** 0.5)
    w1 = jax.random.uniform(k1, (d_model, d_ff), minval=-lim1, maxval=lim1)
    b1 = jax.random.uniform(kb1, (d_ff,), minval=-lim1, maxval=lim1)
    w2 = jax.random.uniform(k2, (d_ff, d_model), minval=-lim2, maxval=lim2)
    b2 = jax.random.uniform(kb2, (d_model,), minval=-lim2, maxval=lim2)
    gamma = jnp.ones((d_model,), jnp.float32)   # LayerNorm weight
    beta = jnp.zeros((d_model,), jnp.float32)   # LayerNorm bias

    ref = _reference(x, w1, b1, w2, b2, gamma, beta)

    # Full-precision path (matmul dtype follows x.dtype == f32): tight check.
    out = ff_resblock(x, w1, b1, w2, b2, gamma, beta)
    out = jax.block_until_ready(out)
    assert out.shape == x.shape and out.dtype == x.dtype
    assert jnp.allclose(out, ref, atol=1e-5, rtol=1e-5), "f32 mismatch vs reference"

    # bf16-MXU path (recommended for v5e/v6e/v7x): loose check vs f32 reference.
    out_bf16 = ff_resblock(x, w1, b1, w2, b2, gamma, beta,
                           matmul_dtype=jnp.bfloat16)
    out_bf16 = jax.block_until_ready(out_bf16)
    assert out_bf16.shape == x.shape
    assert jnp.allclose(out_bf16, ref, atol=0.15, rtol=0.15), "bf16 path mismatch"

    print("KERNEL_OK")
</pallas_src>

<mosaic_0001>
module attributes {stable_mosaic.version = 11 : i64} {
  func.func @_ff_resblock_kernel(%arg0: i32, %arg1: memref<16x32xf32, #tpu.memory_space<vmem>>, %arg2: memref<32x64xf32, #tpu.memory_space<vmem>>, %arg3: memref<1x64xf32, #tpu.memory_space<vmem>>, %arg4: memref<64x32xf32, #tpu.memory_space<vmem>>, %arg5: memref<1x32xf32, #tpu.memory_space<vmem>>, %arg6: memref<1x32xf32, #tpu.memory_space<vmem>>, %arg7: memref<1x32xf32, #tpu.memory_space<vmem>>, %arg8: memref<16x32xf32, #tpu.memory_space<vmem>>) attributes {dimension_semantics = [#tpu.dimension_semantics<parallel>], iteration_bounds = array<i64: 1>, scalar_prefetch = 0 : i64, scratch_operands = 0 : i64, tpu.core_type = #tpu.core_type<tc>, window_params = [{transform_indices = @transform_0, window_bounds = array<i64: 16, 32>}, {pipeline_mode = #tpu.pipeline_mode<synchronous>, transform_indices = @transform_1, window_bounds = array<i64: 32, 64>}, {pipeline_mode = #tpu.pipeline_mode<synchronous>, transform_indices = @transform_2, window_bounds = array<i64: 1, 64>}, {pipeline_mode = #tpu.pipeline_mode<synchronous>, transform_indices = @transform_3, window_bounds = array<i64: 64, 32>}, {pipeline_mode = #tpu.pipeline_mode<synchronous>, transform_indices = @transform_4, window_bounds = array<i64: 1, 32>}, {pipeline_mode = #tpu.pipeline_mode<synchronous>, transform_indices = @transform_5, window_bounds = array<i64: 1, 32>}, {pipeline_mode = #tpu.pipeline_mode<synchronous>, transform_indices = @transform_6, window_bounds = array<i64: 1, 32>}, {transform_indices = @transform_7, window_bounds = array<i64: 16, 32>}]} {
    %c0 = arith.constant 0 : index
    %c0_0 = arith.constant 0 : index
    %0 = vector.load %arg1[%c0, %c0_0] : memref<16x32xf32, #tpu.memory_space<vmem>>, vector<16x32xf32>
    %c0_1 = arith.constant 0 : index
    %c0_2 = arith.constant 0 : index
    %1 = vector.load %arg1[%c0_1, %c0_2] : memref<16x32xf32, #tpu.memory_space<vmem>>, vector<16x32xf32>
    %c0_3 = arith.constant 0 : index
    %c0_4 = arith.constant 0 : index
    %2 = vector.load %arg2[%c0_3, %c0_4] : memref<32x64xf32, #tpu.memory_space<vmem>>, vector<32x64xf32>
    %cst = arith.constant dense<0.000000e+00> : vector<16x64xf32>
    %3 = tpu.matmul %1, %2, %cst {dimension_numbers = #tpu.dot_dimension_numbers<[1], [0], [0], [1], [0, 0, 1, 1], [], []>} : vector<16x32xf32>, vector<32x64xf32>, vector<16x64xf32> -> vector<16x64xf32>
    %c0_5 = arith.constant 0 : index
    %c0_6 = arith.constant 0 : index
    %4 = vector.load %arg3[%c0_5, %c0_6] : memref<1x64xf32, #tpu.memory_space<vmem>>, vector<1x64xf32>
    %5 = vector.broadcast %4 : vector<1x64xf32> to vector<16x64xf32>
    %6 = arith.addf %3, %5 : vector<16x64xf32>
    %cst_7 = arith.constant 0.000000e+00 : f32
    %7 = vector.broadcast %cst_7 : f32 to vector<16x64xf32>
    %8 = arith.maximumf %6, %7 : vector<16x64xf32>
    %c0_8 = arith.constant 0 : index
    %c0_9 = arith.constant 0 : index
    %9 = vector.load %arg4[%c0_8, %c0_9] : memref<64x32xf32, #tpu.memory_space<vmem>>, vector<64x32xf32>
    %cst_10 = arith.constant dense<0.000000e+00> : vector<16x32xf32>
    %10 = tpu.matmul %8, %9, %cst_10 {dimension_numbers = #tpu.dot_dimension_numbers<[1], [0], [0], [1], [0, 0, 1, 1], [], []>} : vector<16x64xf32>, vector<64x32xf32>, vector<16x32xf32> -> vector<16x32xf32>
    %c0_11 = arith.constant 0 : index
    %c0_12 = arith.constant 0 : index
    %11 = vector.load %arg5[%c0_11, %c0_12] : memref<1x32xf32, #tpu.memory_space<vmem>>, vector<1x32xf32>
    %12 = vector.broadcast %11 : vector<1x32xf32> to vector<16x32xf32>
    %13 = arith.addf %10, %12 : vector<16x32xf32>
    %cst_13 = arith.constant 0.000000e+00 : f32
    %14 = vector.broadcast %cst_13 : f32 to vector<16x32xf32>
    %15 = arith.maximumf %13, %14 : vector<16x32xf32>
    %16 = arith.addf %0, %15 : vector<16x32xf32>
    %cst_14 = arith.constant dense<0.000000e+00> : vector<16xf32>
    %17 = vector.multi_reduction <add>, %16, %cst_14 [1] : vector<16x32xf32> to vector<16xf32>
    %18 = vector.shape_cast %17 : vector<16xf32> to vector<16x1xf32>
    %19 = arith.mulf %16, %16 : vector<16x32xf32>
    %cst_15 = arith.constant dense<0.000000e+00> : vector<16xf32>
    %20 = vector.multi_reduction <add>, %19, %cst_15 [1] : vector<16x32xf32> to vector<16xf32>
    %21 = vector.shape_cast %20 : vector<16xf32> to vector<16x1xf32>
    %cst_16 = arith.constant 3.125000e-02 : f32
    %22 = vector.broadcast %cst_16 : f32 to vector<16x1xf32>
    %23 = arith.mulf %18, %22 : vector<16x1xf32>
    %cst_17 = arith.constant 3.125000e-02 : f32
    %24 = vector.broadcast %cst_17 : f32 to vector<16x1xf32>
    %25 = arith.mulf %21, %24 : vector<16x1xf32>
    %26 = arith.mulf %23, %23 : vector<16x1xf32>
    %27 = arith.subf %25, %26 : vector<16x1xf32>
    %cst_18 = arith.constant 0.000000e+00 : f32
    %28 = vector.broadcast %cst_18 : f32 to vector<16x1xf32>
    %29 = arith.maximumf %27, %28 : vector<16x1xf32>
    %30 = vector.broadcast %23 : vector<16x1xf32> to vector<16x32xf32>
    %31 = arith.subf %16, %30 : vector<16x32xf32>
    %cst_19 = arith.constant 9.99999974E-6 : f32
    %32 = vector.broadcast %cst_19 : f32 to vector<16x1xf32>
    %33 = arith.addf %29, %32 : vector<16x1xf32>
    %34 = math.rsqrt %33 : vector<16x1xf32>
    %35 = vector.broadcast %34 : vector<16x1xf32> to vector<16x32xf32>
    %36 = arith.mulf %31, %35 : vector<16x32xf32>
    %c0_20 = arith.constant 0 : index
    %c0_21 = arith.constant 0 : index
    %37 = vector.load %arg6[%c0_20, %c0_21] : memref<1x32xf32, #tpu.memory_space<vmem>>, vector<1x32xf32>
    %38 = vector.broadcast %37 : vector<1x32xf32> to vector<16x32xf32>
    %39 = arith.mulf %36, %38 : vector<16x32xf32>
    %c0_22 = arith.constant 0 : index
    %c0_23 = arith.constant 0 : index
    %40 = vector.load %arg7[%c0_22, %c0_23] : memref<1x32xf32, #tpu.memory_space<vmem>>, vector<1x32xf32>
    %41 = vector.broadcast %40 : vector<1x32xf32> to vector<16x32xf32>
    %42 = arith.addf %39, %41 : vector<16x32xf32>
    %c0_24 = arith.constant 0 : index
    %c0_25 = arith.constant 0 : index
    %43 = vector.load %arg8[%c0_24, %c0_25] : memref<16x32xf32, #tpu.memory_space<vmem>>, vector<16x32xf32>
    tpu.vector_store %arg8[%c0_24, %c0_25], %42 {strides = array<i32>} : memref<16x32xf32, #tpu.memory_space<vmem>>, vector<16x32xf32>,
    return
  }
  func.func @transform_0(%arg0: i32) -> (i32, i32) {
    %c0_i32 = arith.constant 0 : i32
    %c0_i32_0 = arith.constant 0 : i32
    return %arg0, %c0_i32 : i32, i32
  }
  func.func @transform_1(%arg0: i32) -> (i32, i32) {
    %c0_i32 = arith.constant 0 : i32
    %c0_i32_0 = arith.constant 0 : i32
    %c0_i32_1 = arith.constant 0 : i32
    return %c0_i32, %c0_i32_0 : i32, i32
  }
  func.func @transform_2(%arg0: i32) -> (i32, i32) {
    %c0_i32 = arith.constant 0 : i32
    %c0_i32_0 = arith.constant 0 : i32
    %c0_i32_1 = arith.constant 0 : i32
    return %c0_i32, %c0_i32_0 : i32, i32
  }
  func.func @transform_3(%arg0: i32) -> (i32, i32) {
    %c0_i32 = arith.constant 0 : i32
    %c0_i32_0 = arith.constant 0 : i32
    %c0_i32_1 = arith.constant 0 : i32
    return %c0_i32, %c0_i32_0 : i32, i32
  }
  func.func @transform_4(%arg0: i32) -> (i32, i32) {
    %c0_i32 = arith.constant 0 : i32
    %c0_i32_0 = arith.constant 0 : i32
    %c0_i32_1 = arith.constant 0 : i32
    return %c0_i32, %c0_i32_0 : i32, i32
  }
  func.func @transform_5(%arg0: i32) -> (i32, i32) {
    %c0_i32 = arith.constant 0 : i32
    %c0_i32_0 = arith.constant 0 : i32
    %c0_i32_1 = arith.constant 0 : i32
    return %c0_i32, %c0_i32_0 : i32, i32
  }
  func.func @transform_6(%arg0: i32) -> (i32, i32) {
    %c0_i32 = arith.constant 0 : i32
    %c0_i32_0 = arith.constant 0 : i32
    %c0_i32_1 = arith.constant 0 : i32
    return %c0_i32, %c0_i32_0 : i32, i32
  }
  func.func @transform_7(%arg0: i32) -> (i32, i32) {
    %c0_i32 = arith.constant 0 : i32
    %c0_i32_0 = arith.constant 0 : i32
    return %arg0, %c0_i32 : i32, i32
  }
}

module attributes {stable_mosaic.version = 11 : i64} {
  func.func @_ff_resblock_kernel(%arg0: i32, %arg1: memref<16x32xf32, #tpu.memory_space<vmem>>, %arg2: memref<32x64xf32, #tpu.memory_space<vmem>>, %arg3: memref<1x64xf32, #tpu.memory_space<vmem>>, %arg4: memref<64x32xf32, #tpu.memory_space<vmem>>, %arg5: memref<1x32xf32, #tpu.memory_space<vmem>>, %arg6: memref<1x32xf32, #tpu.memory_space<vmem>>, %arg7: memref<1x32xf32, #tpu.memory_space<vmem>>, %arg8: memref<16x32xf32, #tpu.memory_space<vmem>>) attributes {dimension_semantics = [#tpu.dimension_semantics<parallel>], iteration_bounds = array<i64: 1>, scalar_prefetch = 0 : i64, scratch_operands = 0 : i64, tpu.core_type = #tpu.core_type<tc>, window_params = [{transform_indices = @transform_0, window_bounds = array<i64: 16, 32>}, {pipeline_mode = #tpu.pipeline_mode<synchronous>, transform_indices = @transform_1, window_bounds = array<i64: 32, 64>}, {pipeline_mode = #tpu.pipeline_mode<synchronous>, transform_indices = @transform_2, window_bounds = array<i64: 1, 64>}, {pipeline_mode = #tpu.pipeline_mode<synchronous>, transform_indices = @transform_3, window_bounds = array<i64: 64, 32>}, {pipeline_mode = #tpu.pipeline_mode<synchronous>, transform_indices = @transform_4, window_bounds = array<i64: 1, 32>}, {pipeline_mode = #tpu.pipeline_mode<synchronous>, transform_indices = @transform_5, window_bounds = array<i64: 1, 32>}, {pipeline_mode = #tpu.pipeline_mode<synchronous>, transform_indices = @transform_6, window_bounds = array<i64: 1, 32>}, {transform_indices = @transform_7, window_bounds = array<i64: 16, 32>}]} {
    %c0 = arith.constant 0 : index
    %c0_0 = arith.constant 0 : index
    %0 = vector.load %arg1[%c0, %c0_0] : memref<16x32xf32, #tpu.memory_space<vmem>>, vector<16x32xf32>
    %c0_1 = arith.constant 0 : index
    %c0_2 = arith.constant 0 : index
    %1 = vector.load %arg1[%c0_1, %c0_2] : memref<16x32xf32, #tpu.memory_space<vmem>>, vector<16x32xf32>
    %c0_3 = arith.constant 0 : index
    %c0_4 = arith.constant 0 : index
    %2 = vector.load %arg2[%c0_3, %c0_4] : memref<32x64xf32, #tpu.memory_space<vmem>>, vector<32x64xf32>
    %cst = arith.constant dense<0.000000e+00> : vector<16x64xf32>
    %3 = tpu.matmul %1, %2, %cst {dimension_numbers = #tpu.dot_dimension_numbers<[1], [0], [0], [1], [0, 0, 1, 1], [], []>} : vector<16x32xf32>, vector<32x64xf32>, vector<16x64xf32> -> vector<16x64xf32>
    %c0_5 = arith.constant 0 : index
    %c0_6 = arith.constant 0 : index
    %4 = vector.load %arg3[%c0_5, %c0_6] : memref<1x64xf32, #tpu.memory_space<vmem>>, vector<1x64xf32>
    %5 = vector.broadcast %4 : vector<1x64xf32> to vector<16x64xf32>
    %6 = arith.addf %3, %5 : vector<16x64xf32>
    %cst_7 = arith.constant 0.000000e+00 : f32
    %7 = vector.broadcast %cst_7 : f32 to vector<16x64xf32>
    %8 = arith.maximumf %6, %7 : vector<16x64xf32>
    %c0_8 = arith.constant 0 : index
    %c0_9 = arith.constant 0 : index
    %9 = vector.load %arg4[%c0_8, %c0_9] : memref<64x32xf32, #tpu.memory_space<vmem>>, vector<64x32xf32>
    %cst_10 = arith.constant dense<0.000000e+00> : vector<16x32xf32>
    %10 = tpu.matmul %8, %9, %cst_10 {dimension_numbers = #tpu.dot_dimension_numbers<[1], [0], [0], [1], [0, 0, 1, 1], [], []>} : vector<16x64xf32>, vector<64x32xf32>, vector<16x32xf32> -> vector<16x32xf32>
    %c0_11 = arith.constant 0 : index
    %c0_12 = arith.constant 0 : index
    %11 = vector.load %arg5[%c0_11, %c0_12] : memref<1x32xf32, #tpu.memory_space<vmem>>, vector<1x32xf32>
    %12 = vector.broadcast %11 : vector<1x32xf32> to vector<16x32xf32>
    %13 = arith.addf %10, %12 : vector<16x32xf32>
    %cst_13 = arith.constant 0.000000e+00 : f32
    %14 = vector.broadcast %cst_13 : f32 to vector<16x32xf32>
    %15 = arith.maximumf %13, %14 : vector<16x32xf32>
    %16 = arith.addf %0, %15 : vector<16x32xf32>
    %cst_14 = arith.constant dense<0.000000e+00> : vector<16xf32>
    %17 = vector.multi_reduction <add>, %16, %cst_14 [1] : vector<16x32xf32> to vector<16xf32>
    %18 = vector.shape_cast %17 : vector<16xf32> to vector<16x1xf32>
    %19 = arith.mulf %16, %16 : vector<16x32xf32>
    %cst_15 = arith.constant dense<0.000000e+00> : vector<16xf32>
    %20 = vector.multi_reduction <add>, %19, %cst_15 [1] : vector<16x32xf32> to vector<16xf32>
    %21 = vector.shape_cast %20 : vector<16xf32> to vector<16x1xf32>
    %cst_16 = arith.constant 3.125000e-02 : f32
    %22 = vector.broadcast %cst_16 : f32 to vector<16x1xf32>
    %23 = arith.mulf %18, %22 : vector<16x1xf32>
    %cst_17 = arith.constant 3.125000e-02 : f32
    %24 = vector.broadcast %cst_17 : f32 to vector<16x1xf32>
    %25 = arith.mulf %21, %24 : vector<16x1xf32>
    %26 = arith.mulf %23, %23 : vector<16x1xf32>
    %27 = arith.subf %25, %26 : vector<16x1xf32>
    %cst_18 = arith.constant 0.000000e+00 : f32
    %28 = vector.broadcast %cst_18 : f32 to vector<16x1xf32>
    %29 = arith.maximumf %27, %28 : vector<16x1xf32>
    %30 = vector.broadcast %23 : vector<16x1xf32> to vector<16x32xf32>
    %31 = arith.subf %16, %30 : vector<16x32xf32>
    %cst_19 = arith.constant 9.99999974E-6 : f32
    %32 = vector.broadcast %cst_19 : f32 to vector<16x1xf32>
    %33 = arith.addf %29, %32 : vector<16x1xf32>
    %34 = math.rsqrt %33 : vector<16x1xf32>
    %35 = vector.broadcast %34 : vector<16x1xf32> to vector<16x32xf32>
    %36 = arith.mulf %31, %35 : vector<16x32xf32>
    %c0_20 = arith.constant 0 : index
    %c0_21 = arith.constant 0 : index
    %37 = vector.load %arg6[%c0_20, %c0_21] : memref<1x32xf32, #tpu.memory_space<vmem>>, vector<1x32xf32>
    %38 = vector.broadcast %37 : vector<1x32xf32> to vector<16x32xf32>
    %39 = arith.mulf %36, %38 : vector<16x32xf32>
    %c0_22 = arith.constant 0 : index
    %c0_23 = arith.constant 0 : index
    %40 = vector.load %arg7[%c0_22, %c0_23] : memref<1x32xf32, #tpu.memory_space<vmem>>, vector<1x32xf32>
    %41 = vector.broadcast %40 : vector<1x32xf32> to vector<16x32xf32>
    %42 = arith.addf %39, %41 : vector<16x32xf32>
    %c0_24 = arith.constant 0 : index
    %c0_25 = arith.constant 0 : index
    %43 = vector.load %arg8[%c0_24, %c0_25] : memref<16x32xf32, #tpu.memory_space<vmem>>, vector<16x32xf32>
    tpu.vector_store %arg8[%c0_24, %c0_25], %42 {strides = array<i32>} : memref<16x32xf32, #tpu.memory_space<vmem>>, vector<16x32xf32>,
    return
  }
  func.func @transform_0(%arg0: i32) -> (i32, i32) {
    %c0_i32 = arith.constant 0 : i32
    %c0_i32_0 = arith.constant 0 : i32
    return %arg0, %c0_i32 : i32, i32
  }
  func.func @transform_1(%arg0: i32) -> (i32, i32) {
    %c0_i32 = arith.constant 0 : i32
    %c0_i32_0 = arith.constant 0 : i32
    %c0_i32_1 = arith.constant 0 : i32
    return %c0_i32, %c0_i32_0 : i32, i32
  }
  func.func @transform_2(%arg0: i32) -> (i32, i32) {
    %c0_i32 = arith.constant 0 : i32
    %c0_i32_0 = arith.constant 0 : i32
    %c0_i32_1 = arith.constant 0 : i32
    return %c0_i32, %c0_i32_0 : i32, i32
  }
  func.func @transform_3(%arg0: i32) -> (i32, i32) {
    %c0_i32 = arith.constant 0 : i32
    %c0_i32_0 = arith.constant 0 : i32
    %c0_i32_1 = arith.constant 0 : i32
    return %c0_i32, %c0_i32_0 : i32, i32
  }
  func.func @transform_4(%arg0: i32) -> (i32, i32) {
    %c0_i32 = arith.constant 0 : i32
    %c0_i32_0 = arith.constant 0 : i32
    %c0_i32_1 = arith.constant 0 : i32
    return %c0_i32, %c0_i32_0 : i32, i32
  }
  func.func @transform_5(%arg0: i32) -> (i32, i32) {
    %c0_i32 = arith.constant 0 : i32
    %c0_i32_0 = arith.constant 0 : i32
    %c0_i32_1 = arith.constant 0 : i32
    return %c0_i32, %c0_i32_0 : i32, i32
  }
  func.func @transform_6(%arg0: i32) -> (i32, i32) {
    %c0_i32 = arith.constant 0 : i32
    %c0_i32_0 = arith.constant 0 : i32
    %c0_i32_1 = arith.constant 0 : i32
    return %c0_i32, %c0_i32_0 : i32, i32
  }
  func.func @transform_7(%arg0: i32) -> (i32, i32) {
    %c0_i32 = arith.constant 0 : i32
    %c0_i32_0 = arith.constant 0 : i32
    return %arg0, %c0_i32 : i32, i32
  }
}

</mosaic_0001>

<bundles_post_ra>
// kernel: tpu_custom_call.1
= control target key start
LH: loop header
LB: loop body
LE: loop exit
PB: predicated region body
PF: predicated region fallthrough
CT: control target
= control target key end

     0   :  { %vm40_vm0 = vcmask 261120   ;;  %s484_s0 = inlined_call_operand.vmem [shape: f32[16,32], index: 0, kind: input, shape index: {}]   ;;  %s485_s1 = inlined_call_operand.vmem [shape: f32[32,64], index: 1, kind: input, shape index: {}]   ;;  %s486_s2 = inlined_call_operand.vmem [shape: f32[1,64], index: 2, kind: input, shape index: {}]   ;;  %s487_s3 = inlined_call_operand.vmem [shape: f32[64,32], index: 3, kind: input, shape index: {}]   ;;  %s488_s4 = inlined_call_operand.vmem [shape: f32[1,32], index: 4, kind: input, shape index: {}]   ;;  %s489_s5 = inlined_call_operand.vmem [shape: f32[1,32], index: 5, kind: input, shape index: {}]   ;;  %s490_s6 = inlined_call_operand.vmem [shape: f32[1,32], index: 6, kind: input, shape index: {}]   ;;  %s491_s7 = inlined_call_operand.hbm [shape: f32[16,32], index: 7, kind: output, shape index: {}]  }
   0x1   :  { %v32_v0 = vld [vmem:[%s485_s1 + $0x18] sm:$0xff]  ;;  %v31_v1 = vld [vmem:[%s485_s1 + $0x10] sm:$0xff]  ;;  %v27_v2 = vld [vmem:[%s484_s0] sm:$0xff] }
   0x2   :  { %317 = vmatprep.subr.mxu0 %v32_v0  ;;  %v30_v3 = vld [vmem:[%s485_s1 + $0x8] sm:$0xff]  ;;  %325 = vmatprep.mubr.msk.f32.mxu0 %vm40_vm0, %v27_v2  ;;  %v131_v4 = vld [vmem:[%s487_s3 + $0x38] sm:$0xff]  ;;  %v130_v5 = vld [vmem:[%s487_s3 + $0x30] sm:$0xff] }
   0x3   :  { %318 = vmatpush3.msra.mxu0 %v32_v0  ;;  %328 = vmatprep.subr.mxu1 %v131_v4 }
   0x4   :  { %319 = vmatprep.subr.mxu0 %v31_v1 }
   0x5   :  { %12 = vsyncpa [#allocation3], 0  ;;  %320 = vmatpush3.msra.mxu0 %v31_v1  ;;  %v29_v6 = vld [vmem:[%s485_s1] sm:$0xff]  ;;  %329 = vmatpush3.msra.mxu1 %v131_v4  ;;  %v129_v7 = vld [vmem:[%s487_s3 + $0x28] sm:$0xff]  ;;  %vm139_vm1 = vcmask 523264   ;;  %s376_s9 = smov [#allocation2]  }
   0x6   :  { %321 = vmatprep.subr.mxu0 %v30_v3  ;;  %330 = vmatprep.subr.mxu1 %v130_v5  ;;  %v28_v8 = vld [vmem:[%s484_s0 + $0x8] sm:$0xff]  ;;  %v128_v9 = vld [vmem:[%s487_s3 + $0x20] sm:$0xff]  ;;  %v127_v10 = vld [vmem:[%s487_s3 + $0x18] sm:$0xff]  ;;  %s282_s10 = sshll.u32 %s376_s9, 4  ;;  %s283_s10 = int_to_ptr.vmem [resolvable:$true] %s282_s10 }
   0x7   :  { %322 = vmatpush3.msra.mxu0 %v30_v3  ;;  %331 = vmatpush3.msra.mxu1 %v130_v5  ;;  %v126_v11 = vld [vmem:[%s487_s3 + $0x10] sm:$0xff]  ;;  %v125_v12 = vld [vmem:[%s487_s3 + $0x8] sm:$0xff]  ;;  %v124_v13 = vld [vmem:[%s487_s3] sm:$0xff]  ;;  %p359_p1 = scmp.lt.s32.totalorder %s283_s10, %s283_s10 }
   0x8   :  { %323 = vmatprep.subr.mxu0 %v29_v6  ;;  %332 = vmatprep.subr.mxu1 %v129_v7  ;;  %v293_v14 = vld [vmem:[%s486_s2] ss:$0 sm:$0xff] }
   0x9   :  { %324 = vmatpush3.msra.mxu0 %v29_v6  ;;  %333 = vmatpush3.msra.mxu1 %v129_v7  ;;  %v296_v21 = vld [vmem:[%s488_s4] ss:$0 sm:$0xff] }
   0xa   :  { %326 = vmatmul.mubr.msk.f32.vlgmr.msra.gmra.mxu0 %vm40_vm0, %v28_v8  ;;  %334 = vmatprep.subr.mxu1 %v128_v9  ;;  %v299_v54 = vld [vmem:[%s489_s5] ss:$0 sm:$0xff]  ;;  %s354_s5 = scalar_lea.vmem %s283_s10, 256 }
   0xb   :  { %335 = vmatpush3.msra.mxu1 %v128_v9  ;;  %v300_v56 = vld [vmem:[%s490_s6] ss:$0 sm:$0xff]  ;;  %p355_p0 = scmp.ne.s32.totalorder %s283_s10, %s354_s5  ;;  %p360_p2 = scmp.lt.s32.totalorder %s354_s5, %s354_s5 }
   0xc   :  { %336 = vmatprep.subr.mxu1 %v127_v10 }
   0xd   :  { %337 = vmatpush3.msra.mxu1 %v127_v10  ;;  %p361_p3 = por %p360_p2, %p359_p1 }
   0xe   :  { %338 = vmatprep.subr.mxu1 %v126_v11 }
   0xf   :  { %339 = vmatpush3.msra.mxu1 %v126_v11  ;;  %p362_p4 = pnand %p361_p3, %p355_p0 }
  0x10   :  { %340 = vmatprep.subr.mxu1 %v125_v12 }
  0x11   :  { %341 = vmatpush3.msra.mxu1 %v125_v12 }
  0x12   :  { %342 = vmatprep.subr.mxu1 %v124_v13 }
  0x13   :  { %343 = vmatpush3.msra.mxu1 %v124_v13 }
  0xca   :  { %v327_v15 = vpop.f32.mrf.mxu0 }
  0xcb   :  { %v119_v16 = vadd.f32 %v327_v15, %v293_v14 }
  0xcc   :  { %v113_v17 = vpop.f32.mrf.mxu0 }
  0xcd   :  { %v114_v18 = vadd.f32 %v293_v14, %v113_v17  ;;  %v123_v20 = vmax.f32 %v119_v16, 0.0 }
  0xcf   :  { %v122_v19 = vmax.f32 %v114_v18, 0.0 }
  0xd1   :  { %344 = vmatprep.mubr.msk.f32.mxu1 %vm139_vm1, %v122_v19 }
  0xd2   :  { %345 = vmatmul.mubr.msk.f32.vlgmr.msra.gmra.mxu1 %vm139_vm1, %v123_v20 }
 0x192   :  { %v346_v22 = vpop.f32.mrf.mxu1 }
 0x193   :  { %v218_v23 = vadd.f32 %v346_v22, %v296_v21 }
 0x194   :  { %v212_v24 = vpop.f32.mrf.mxu1 }
 0x195   :  { %v222_v25 = vmax.f32 %v218_v23, 0.0  ;;  %v213_v26 = vadd.f32 %v296_v21, %v212_v24 }
 0x197   :  { %v221_v27 = vmax.f32 %v213_v26, 0.0  ;;  %v224_v28 = vadd.f32 %v222_v25, %v28_v8 }
 0x199   :  { %v223_v29 = vadd.f32 %v221_v27, %v27_v2  ;;  %v232_v33 = vmul.f32 %v224_v28, %v224_v28  ;;  %v228_v34 = vsel %vm40_vm0, %v224_v28, 0.0 }
 0x19b   :  { %v225_v30 = vsel %vm40_vm0, %v223_v29, 0.0  ;;  %v231_v31 = vmul.f32 %v223_v29, %v223_v29  ;;  %v236_v35 = vsel %vm40_vm0, %v232_v33, 0.0 }
 0x19c   :  { %226 = vadd.xlane.f32.xlu0 %v225_v30 }
 0x19d   :  { %v233_v32 = vsel %vm40_vm0, %v231_v31, 0.0 }
 0x19e   :  { %234 = vadd.xlane.f32.xlu1 %v233_v32 }
 0x1a0   :  { %229 = vadd.xlane.f32.xlu0 %v228_v34 }
 0x1a2   :  { %237 = vadd.xlane.f32.xlu1 %v236_v35 }
 0x225   :  { %v227_v36 = vpop.xlane.xlu0 %226 }
 0x226   :  { %v239_v37 = vmul.f32 0.03125, %v227_v36 }
 0x227   :  { %v235_v38 = vpop.xlane.xlu1 %234 }
 0x228   :  { %v243_v39 = vmul.f32 %v239_v37, %v239_v37  ;;  %v241_v40 = vmul.f32 0.03125, %v235_v38  ;;  %v249_v52 = vsub.f32 %v223_v29, %v239_v37 }
 0x229   :  { %v230_v41 = vpop.xlane.xlu0 %229 }
 0x22a   :  { %v245_v42 = vsub.f32 %v241_v40, %v243_v39  ;;  %v240_v43 = vmul.f32 0.03125, %v230_v41 }
 0x22b   :  { %v238_v44 = vpop.xlane.xlu1 %237 }
 0x22c   :  { %v247_v45 = vmax.f32 %v245_v42, 0.0  ;;  %v244_v46 = vmul.f32 %v240_v43, %v240_v43  ;;  %v242_v47 = vmul.f32 0.03125, %v238_v44  ;;  %v250_v57 = vsub.f32 %v224_v28, %v240_v43 }
 0x22e   :  { %v251_v48 = vadd.f32 1e-05, %v247_v45  ;;  %v246_v49 = vsub.f32 %v242_v47, %v244_v46 }
 0x230   :  { %350 = vrsqrt.f32 %v251_v48  ;;  %v248_v50 = vmax.f32 %v246_v49, 0.0 }
 0x232   :  { %v252_v51 = vadd.f32 1e-05, %v248_v50 }
 0x234   :  { %352 = vrsqrt.f32 %v252_v51 }
 0x23d   :  { %v351_v53 = vpop.eup %350 }
 0x23e   :  { %v255_v55 = vmul.f32 %v351_v53, %v249_v52 }
 0x240   :  { %v264_v58 = vmul.f32 %v299_v54, %v255_v55 }
 0x241   :  { %v353_v59 = vpop.eup %352 }
 0x242   :  { %v256_v60 = vmul.f32 %v353_v59, %v250_v57  ;;  %v273_v61 = vadd.f32 %v300_v56, %v264_v58 }
 0x244   :  { %v265_v62 = vmul.f32 %v299_v54, %v256_v60  ;;  %275 = vst.msk [vmem:[#allocation2] sm:$0xff] %vm40_vm0, %v273_v61 }
 0x246   :  { %v274_v63 = vadd.f32 %v300_v56, %v265_v62 }
 0x248   :  { %276 = vst.msk [vmem:[#allocation2 + $0x8] sm:$0xff] %vm40_vm0, %v274_v63 }
 0x249   :  { %365 = shalt.err (!%p362_p4)
}
 0x24a   :  { %s377_s6 = smov 128   ;;  %s378_s11 = smov 8  }
 0x24b   :  { %288 = dma.vmem_to_hbm [thread:$0]  %s283_s10, 256, %s491_s7, [#allocation3], %s377_s6, %s377_s6, %s378_s11  }
 0x24c   :  { %374 = dma.done.wait [#allocation3], 256  }
 0x24d   :  { %375 = vsyncadd [#allocation3], 4294967040 }
 0x24e   :  { %292 = vsyncpa [#allocation3], 1 }

// kernel: tpu_custom_call.1
= control target key start
LH: loop header
LB: loop body
LE: loop exit
PB: predicated region body
PF: predicated region fallthrough
CT: control target
= control target key end

     0   :  { %vm40_vm0 = vcmask 261120   ;;  %s484_s0 = inlined_call_operand.vmem [shape: f32[16,32], index: 0, kind: input, shape index: {}]   ;;  %s485_s1 = inlined_call_operand.vmem [shape: f32[32,64], index: 1, kind: input, shape index: {}]   ;;  %s486_s2 = inlined_call_operand.vmem [shape: f32[1,64], index: 2, kind: input, shape index: {}]   ;;  %s487_s3 = inlined_call_operand.vmem [shape: f32[64,32], index: 3, kind: input, shape index: {}]   ;;  %s488_s4 = inlined_call_operand.vmem [shape: f32[1,32], index: 4, kind: input, shape index: {}]   ;;  %s489_s5 = inlined_call_operand.vmem [shape: f32[1,32], index: 5, kind: input, shape index: {}]   ;;  %s490_s6 = inlined_call_operand.vmem [shape: f32[1,32], index: 6, kind: input, shape index: {}]   ;;  %s491_s7 = inlined_call_operand.hbm [shape: f32[16,32], index: 7, kind: output, shape index: {}]  }
   0x1   :  { %v32_v0 = vld [vmem:[%s485_s1 + $0x18] sm:$0xff]  ;;  %v31_v1 = vld [vmem:[%s485_s1 + $0x10] sm:$0xff]  ;;  %v27_v2 = vld [vmem:[%s484_s0] sm:$0xff] }
   0x2   :  { %317 = vmatprep.subr.mxu0 %v32_v0  ;;  %v30_v3 = vld [vmem:[%s485_s1 + $0x8] sm:$0xff]  ;;  %325 = vmatprep.mubr.msk.f32.mxu0 %vm40_vm0, %v27_v2  ;;  %v131_v4 = vld [vmem:[%s487_s3 + $0x38] sm:$0xff]  ;;  %v130_v5 = vld [vmem:[%s487_s3 + $0x30] sm:$0xff] }
   0x3   :  { %318 = vmatpush3.msra.mxu0 %v32_v0  ;;  %328 = vmatprep.subr.mxu1 %v131_v4 }
   0x4   :  { %319 = vmatprep.subr.mxu0 %v31_v1 }
   0x5   :  { %12 = vsyncpa [#allocation3], 0  ;;  %320 = vmatpush3.msra.mxu0 %v31_v1  ;;  %v29_v6 = vld [vmem:[%s485_s1] sm:$0xff]  ;;  %329 = vmatpush3.msra.mxu1 %v131_v4  ;;  %v129_v7 = vld [vmem:[%s487_s3 + $0x28] sm:$0xff]  ;;  %vm139_vm1 = vcmask 523264   ;;  %s376_s9 = smov [#allocation2]  }
   0x6   :  { %321 = vmatprep.subr.mxu0 %v30_v3  ;;  %330 = vmatprep.subr.mxu1 %v130_v5  ;;  %v28_v8 = vld [vmem:[%s484_s0 + $0x8] sm:$0xff]  ;;  %v128_v9 = vld [vmem:[%s487_s3 + $0x20] sm:$0xff]  ;;  %v127_v10 = vld [vmem:[%s487_s3 + $0x18] sm:$0xff]  ;;  %s282_s10 = sshll.u32 %s376_s9, 4  ;;  %s283_s10 = int_to_ptr.vmem [resolvable:$true] %s282_s10 }
   0x7   :  { %322 = vmatpush3.msra.mxu0 %v30_v3  ;;  %331 = vmatpush3.msra.mxu1 %v130_v5  ;;  %v126_v11 = vld [vmem:[%s487_s3 + $0x10] sm:$0xff]  ;;  %v125_v12 = vld [vmem:[%s487_s3 + $0x8] sm:$0xff]  ;;  %v124_v13 = vld [vmem:[%s487_s3] sm:$0xff]  ;;  %p359_p1 = scmp.lt.s32.totalorder %s283_s10, %s283_s10 }
   0x8   :  { %323 = vmatprep.subr.mxu0 %v29_v6  ;;  %332 = vmatprep.subr.mxu1 %v129_v7  ;;  %v293_v14 = vld [vmem:[%s486_s2] ss:$0 sm:$0xff] }
   0x9   :  { %324 = vmatpush3.msra.mxu0 %v29_v6  ;;  %333 = vmatpush3.msra.mxu1 %v129_v7  ;;  %v296_v21 = vld [vmem:[%s488_s4] ss:$0 sm:$0xff] }
   0xa   :  { %326 = vmatmul.mubr.msk.f32.vlgmr.msra.gmra.mxu0 %vm40_vm0, %v28_v8  ;;  %334 = vmatprep.subr.mxu1 %v128_v9  ;;  %v299_v54 = vld [vmem:[%s489_s5] ss:$0 sm:$0xff]  ;;  %s354_s5 = scalar_lea.vmem %s283_s10, 256 }
   0xb   :  { %335 = vmatpush3.msra.mxu1 %v128_v9  ;;  %v300_v56 = vld [vmem:[%s490_s6] ss:$0 sm:$0xff]  ;;  %p355_p0 = scmp.ne.s32.totalorder %s283_s10, %s354_s5  ;;  %p360_p2 = scmp.lt.s32.totalorder %s354_s5, %s354_s5 }
   0xc   :  { %336 = vmatprep.subr.mxu1 %v127_v10 }
   0xd   :  { %337 = vmatpush3.msra.mxu1 %v127_v10  ;;  %p361_p3 = por %p360_p2, %p359_p1 }
   0xe   :  { %338 = vmatprep.subr.mxu1 %v126_v11 }
   0xf   :  { %339 = vmatpush3.msra.mxu1 %v126_v11  ;;  %p362_p4 = pnand %p361_p3, %p355_p0 }
  0x10   :  { %340 = vmatprep.subr.mxu1 %v125_v12 }
  0x11   :  { %341 = vmatpush3.msra.mxu1 %v125_v12 }
  0x12   :  { %342 = vmatprep.subr.mxu1 %v124_v13 }
  0x13   :  { %343 = vmatpush3.msra.mxu1 %v124_v13 }
  0xca   :  { %v327_v15 = vpop.f32.mrf.mxu0 }
  0xcb   :  { %v119_v16 = vadd.f32 %v327_v15, %v293_v14 }
  0xcc   :  { %v113_v17 = vpop.f32.mrf.mxu0 }
  0xcd   :  { %v114_v18 = vadd.f32 %v293_v14, %v113_v17  ;;  %v123_v20 = vmax.f32 %v119_v16, 0.0 }
  0xcf   :  { %v122_v19 = vmax.f32 %v114_v18, 0.0 }
  0xd1   :  { %344 = vmatprep.mubr.msk.f32.mxu1 %vm139_vm1, %v122_v19 }
  0xd2   :  { %345 = vmatmul.mubr.msk.f32.vlgmr.msra.gmra.mxu1 %vm139_vm1, %v123_v20 }
 0x192   :  { %v346_v22 = vpop.f32.mrf.mxu1 }
 0x193   :  { %v218_v23 = vadd.f32 %v346_v22, %v296_v21 }
 0x194   :  { %v212_v24 = vpop.f32.mrf.mxu1 }
 0x195   :  { %v222_v25 = vmax.f32 %v218_v23, 0.0  ;;  %v213_v26 = vadd.f32 %v296_v21, %v212_v24 }
 0x197   :  { %v221_v27 = vmax.f32 %v213_v26, 0.0  ;;  %v224_v28 = vadd.f32 %v222_v25, %v28_v8 }
 0x199   :  { %v223_v29 = vadd.f32 %v221_v27, %v27_v2  ;;  %v232_v33 = vmul.f32 %v224_v28, %v224_v28  ;;  %v228_v34 = vsel %vm40_vm0, %v224_v28, 0.0 }
 0x19b   :  { %v225_v30 = vsel %vm40_vm0, %v223_v29, 0.0  ;;  %v231_v31 = vmul.f32 %v223_v29, %v223_v29  ;;  %v236_v35 = vsel %vm40_vm0, %v232_v33, 0.0 }
 0x19c   :  { %226 = vadd.xlane.f32.xlu0 %v225_v30 }
 0x19d   :  { %v233_v32 = vsel %vm40_vm0, %v231_v31, 0.0 }
 0x19e   :  { %234 = vadd.xlane.f32.xlu1 %v233_v32 }
 0x1a0   :  { %229 = vadd.xlane.f32.xlu0 %v228_v34 }
 0x1a2   :  { %237 = vadd.xlane.f32.xlu1 %v236_v35 }
 0x225   :  { %v227_v36 = vpop.xlane.xlu0 %226 }
 0x226   :  { %v239_v37 = vmul.f32 0.03125, %v227_v36 }
 0x227   :  { %v235_v38 = vpop.xlane.xlu1 %234 }
 0x228   :  { %v243_v39 = vmul.f32 %v239_v37, %v239_v37  ;;  %v241_v40 = vmul.f32 0.03125, %v235_v38  ;;  %v249_v52 = vsub.f32 %v223_v29, %v239_v37 }
 0x229   :  { %v230_v41 = vpop.xlane.xlu0 %229 }
 0x22a   :  { %v245_v42 = vsub.f32 %v241_v40, %v243_v39  ;;  %v240_v43 = vmul.f32 0.03125, %v230_v41 }
 0x22b   :  { %v238_v44 = vpop.xlane.xlu1 %237 }
 0x22c   :  { %v247_v45 = vmax.f32 %v245_v42, 0.0  ;;  %v244_v46 = vmul.f32 %v240_v43, %v240_v43  ;;  %v242_v47 = vmul.f32 0.03125, %v238_v44  ;;  %v250_v57 = vsub.f32 %v224_v28, %v240_v43 }
 0x22e   :  { %v251_v48 = vadd.f32 1e-05, %v247_v45  ;;  %v246_v49 = vsub.f32 %v242_v47, %v244_v46 }
 0x230   :  { %350 = vrsqrt.f32 %v251_v48  ;;  %v248_v50 = vmax.f32 %v246_v49, 0.0 }
 0x232   :  { %v252_v51 = vadd.f32 1e-05, %v248_v50 }
 0x234   :  { %352 = vrsqrt.f32 %v252_v51 }
 0x23d   :  { %v351_v53 = vpop.eup %350 }
 0x23e   :  { %v255_v55 = vmul.f32 %v351_v53, %v249_v52 }
 0x240   :  { %v264_v58 = vmul.f32 %v299_v54, %v255_v55 }
 0x241   :  { %v353_v59 = vpop.eup %352 }
 0x242   :  { %v256_v60 = vmul.f32 %v353_v59, %v250_v57  ;;  %v273_v61 = vadd.f32 %v300_v56, %v264_v58 }
 0x244   :  { %v265_v62 = vmul.f32 %v299_v54, %v256_v60  ;;  %275 = vst.msk [vmem:[#allocation2] sm:$0xff] %vm40_vm0, %v273_v61 }
 0x246   :  { %v274_v63 = vadd.f32 %v300_v56, %v265_v62 }
 0x248   :  { %276 = vst.msk [vmem:[#allocation2 + $0x8] sm:$0xff] %vm40_vm0, %v274_v63 }
 0x249   :  { %365 = shalt.err (!%p362_p4)
}
 0x24a   :  { %s377_s6 = smov 128   ;;  %s378_s11 = smov 8  }
 0x24b   :  { %288 = dma.vmem_to_hbm [thread:$0]  %s283_s10, 256, %s491_s7, [#allocation3], %s377_s6, %s377_s6, %s378_s11  }
 0x24c   :  { %374 = dma.done.wait [#allocation3], 256  }
 0x24d   :  { %375 = vsyncadd [#allocation3], 4294967040 }
 0x24e   :  { %292 = vsyncpa [#allocation3], 1 }

</bundles_post_ra>
